<compile_context>
chip_gen: v6e
topology: v6e:2x2x1
jax: 0.10.0
libtpu: 0.0.40
codegen_flags: <defaults>
</compile_context>

<pallas_src>
import functools

import jax
import jax.numpy as jnp
from jax.experimental import pallas as pl
from jax.experimental.pallas import tpu as pltpu

EPS = 1e-5
LANE = 128


def _resblock_kernel(x_ref, aff_ref, w_ref, out_ref, *,
                     channels, groups_per_row, rows_per_image, inv_count):
    x = x_ref[...]                                   # (R, L) f32 lane-dense slab
    R, L = x.shape
    C = channels

    aff = aff_ref[...]                               # (8, L) packed per-channel rows
    g1, b1 = aff[0:1], aff[1:2]
    g2, b2 = aff[2:3], aff[3:4]
    cb2 = aff[4:5]

    # Row masks for the +/-1 image-row shifted operands: zero rows whose shifted
    # source crosses an image boundary (also covers the cyclic roll wrap).
    row = jax.lax.broadcasted_iota(jnp.int32, (R, 1), 0) % rows_per_image
    keep_next = (row != rows_per_image - 1).astype(jnp.float32)   # (R, 1)
    keep_prev = (row != 0).astype(jnp.float32)                    # (R, 1)

    def fold_channels(v):
        # Cyclic log-tree reduction along lanes: afterwards every lane holds the
        # sum over all lanes of its channel (period-C pattern), i.e. per-channel
        # totals already broadcast into the lane-dense layout.
        shift = C
        for _ in range(groups_per_row.bit_length() - 1):    # log2(groups) steps
            v = v + pltpu.roll(v, shift, axis=1)
            shift *= 2
        return v

    def bn_relu(h, gamma_t, beta_t):
        # Two-pass batch statistics (training-mode BN, biased variance):
        # subtract the mean before squaring to avoid catastrophic cancellation.
        mean = fold_channels(jnp.sum(h, axis=0, keepdims=True)) * inv_count
        centered = h - mean
        var = fold_channels(jnp.sum(centered * centered, axis=0,
                                    keepdims=True)) * inv_count
        scale = gamma_t * jax.lax.rsqrt(var + EPS)             # (1, L)
        return jnp.maximum(centered * scale + beta_t, 0.0)

    def conv3x3(h, base):
        # w_ref[base + k], k in {0,1,2}: (L, L) bf16 band matrices for image-row
        # offsets {-1, 0, +1}.  bf16 MXU operands, f32 accumulation; three
        # back-to-back accumulations into one acc.
        acc = jnp.dot(h.astype(jnp.bfloat16), w_ref[base + 1],
                      preferred_element_type=jnp.float32)
        nxt = (pltpu.roll(h, R - 1, axis=0) * keep_next).astype(jnp.bfloat16)
        acc += jnp.dot(nxt, w_ref[base + 2], preferred_element_type=jnp.float32)
        prv = (pltpu.roll(h, 1, axis=0) * keep_prev).astype(jnp.bfloat16)
        acc += jnp.dot(prv, w_ref[base + 0], preferred_element_type=jnp.float32)
        return acc

    h = bn_relu(x, g1, b1)
    h = conv3x3(h, 0)                        # in_conv (no bias)
    h = bn_relu(h, g2, b2)
    h = conv3x3(h, 3) + cb2                  # out_conv (bias)
    # Residual: re-read the skip from the still-resident input block instead of
    # keeping `x` live across both convs.
    out_ref[...] = (h + x_ref[...]).astype(out_ref.dtype)


def _band_matrices(w_hwio, W, C, P):
    """Fold the 3x3 taps, W-shifts and channel mixing into three (L, L) lane
    mixing matrices (image-row offsets -1, 0, +1).  L = P*W*C lanes encode
    (h % P, w, c); W-boundary zero padding is implicit in the band structure."""
    L = P * W * C
    lane = jnp.arange(L)
    p = lane // (W * C)
    w = (lane // C) % W
    c = lane % C
    mats = []
    for dr in (-1, 0, 1):
        dy = P * dr + p[:, None] - p[None, :]       # input h - output h
        dx = w[:, None] - w[None, :]                # input w - output w
        valid = (jnp.abs(dy) <= 1) & (jnp.abs(dx) <= 1)
        ky = jnp.clip(dy + 1, 0, 2)
        kx = jnp.clip(dx + 1, 0, 2)
        vals = w_hwio[ky, kx, c[:, None], c[None, :]]           # (L, L)
        mats.append(jnp.where(valid, vals, 0.0))
    return jnp.stack(mats, axis=0)                  # (3, L, L) = [dr=-1, 0, +1]


def _weight_norm(v_oihw, g_o):
    # PyTorch weight_norm (dim=0): w = g * v / ||v|| with norm over (I, kh, kw)
    norm = jnp.sqrt(jnp.sum(v_oihw ** 2, axis=(1, 2, 3), keepdims=True))
    return g_o.reshape(-1, 1, 1, 1) * v_oihw / norm


def prepare_params(bn1_gamma, bn1_beta, v1_oihw, g1, bn2_gamma, bn2_beta,
                   v2_oihw, g2, conv2_bias, *, H, W):
    """One-time parameter setup, hoisted out of the per-call path:
    weight-norm reparameterization, OIHW->HWIO, band-matrix folding (bf16),
    and lane-tiling + packing of the per-channel affine vectors."""
    C = v1_oihw.shape[1]
    if W * C > LANE or LANE % (W * C) != 0:
        raise ValueError("layout requires W*C <= 128 and 128 % (W*C) == 0")
    P = max(1, LANE // (W * C))          # image rows packed per slab row
    L = P * W * C                        # slab lane width (=128 here)

    w1_hwio = jnp.transpose(_weight_norm(v1_oihw, g1), (2, 3, 1, 0))
    w2_hwio = jnp.transpose(_weight_norm(v2_oihw, g2), (2, 3, 1, 0))
    bands = jnp.concatenate(
        [_band_matrices(w1_hwio, W, C, P),
         _band_matrices(w2_hwio, W, C, P)], axis=0).astype(jnp.bfloat16)

    reps = L // C
    tile = lambda v: jnp.tile(v.reshape(1, C).astype(jnp.float32), (1, reps))
    affine = jnp.concatenate(
        [tile(bn1_gamma), tile(bn1_beta), tile(bn2_gamma), tile(bn2_beta),
         tile(conv2_bias), jnp.zeros((3, L), jnp.float32)], axis=0)  # (8, L)

    return {"bands": bands, "affine": affine}


@jax.jit
def residual_block_nhwc(x_nhwc, bands, affine):
    """Per-call path: NHWC activation -> lane-dense slab -> pallas kernel."""
    N, H, W, C = x_nhwc.shape
    P = max(1, LANE // (W * C))
    L = P * W * C
    assert W * C <= LANE and LANE % (W * C) == 0, "need W*C <= 128 dividing 128"
    assert H % P == 0, "H must be divisible by the row-packing factor"
    R = (N * H) // P
    rows_per_image = H // P
    groups_per_row = L // C
    assert (groups_per_row & (groups_per_row - 1)) == 0, \
        "lane groups per row must be a power of two for the roll reduction"

    x_slab = x_nhwc.astype(jnp.float32).reshape(R, L)   # pure reshape, no transpose

    kernel = functools.partial(
        _resblock_kernel, channels=C, groups_per_row=groups_per_row,
        rows_per_image=rows_per_image, inv_count=1.0 / (N * H * W))

    full = lambda shape: pl.BlockSpec(shape, lambda i: (0,) * len(shape))
    out_slab = pl.pallas_call(
        kernel,
        out_shape=jax.ShapeDtypeStruct((R, L), jnp.float32),
        grid=(1,),
        in_specs=[full((R, L)),          # activation slab
                  full((8, L)),          # packed BN gamma/beta + conv2 bias
                  full((6, L, L))],      # packed bf16 band matrices (both convs)
        out_specs=full((R, L)),
        compiler_params=pltpu.CompilerParams(dimension_semantics=("arbitrary",)),
    )(x_slab, affine, bands)

    return out_slab.reshape(N, H, W, C)


def residual_block_nchw(x_nchw, bands, affine):
    # Convenience wrapper matching the PyTorch NCHW interface.  In a real
    # pipeline keep activations NHWC (or the lane-dense slab) end-to-end so
    # these transposes (full HBM round-trips of the activation) disappear.
    x_nhwc = jnp.transpose(x_nchw, (0, 2, 3, 1))
    out_nhwc = residual_block_nhwc(x_nhwc, bands, affine)
    return jnp.transpose(out_nhwc, (0, 3, 1, 2))


def _reference(x_nchw, g1, b1, w1_oihw, g2, b2, w2_oihw, cb2):
    # pure-JAX f32 reference of the PyTorch forward (training-mode BN)
    def bn(h, g, b):
        mean = jnp.mean(h, axis=(0, 2, 3), keepdims=True)
        var = jnp.mean((h - mean) ** 2, axis=(0, 2, 3), keepdims=True)
        return (h - mean) / jnp.sqrt(var + EPS) * g.reshape(1, -1, 1, 1) \
            + b.reshape(1, -1, 1, 1)

    def conv(h, w, bias=None):
        y = jax.lax.conv_general_dilated(
            h, w, window_strides=(1, 1), padding=((1, 1), (1, 1)),
            dimension_numbers=("NCHW", "OIHW", "NCHW"))
        return y if bias is None else y + bias.reshape(1, -1, 1, 1)

    skip = x_nchw
    h = jax.nn.relu(bn(x_nchw, g1, b1))
    h = conv(h, w1_oihw)
    h = jax.nn.relu(bn(h, g2, b2))
    h = conv(h, w2_oihw, cb2)
    return h + skip


if __name__ == "__main__":
    N, C, H, W = 2, 4, 16, 16   # in_channels == out_channels (residual add)

    key = jax.random.PRNGKey(0)
    kx, kv1, kg1w, kg1b, kv2, kg2w, kg2b, kbias = jax.random.split(key, 8)

    x_nchw = jax.random.normal(kx, (N, C, H, W), jnp.float32)

    # BN params (deterministic, non-trivial)
    bn1_gamma = 1.0 + 0.1 * jax.random.normal(kg1w, (C,), jnp.float32)
    bn1_beta = 0.1 * jax.random.normal(kg1b, (C,), jnp.float32)
    bn2_gamma = 1.0 + 0.1 * jax.random.normal(kg2w, (C,), jnp.float32)
    bn2_beta = 0.1 * jax.random.normal(kg2b, (C,), jnp.float32)

    # Weight-normalized conv params (v: OIHW, g: per output channel = ||v||)
    v1 = 0.1 * jax.random.normal(kv1, (C, C, 3, 3), jnp.float32)
    g1c = jnp.sqrt(jnp.sum(v1 ** 2, axis=(1, 2, 3)))
    v2 = 0.1 * jax.random.normal(kv2, (C, C, 3, 3), jnp.float32)
    g2c = jnp.sqrt(jnp.sum(v2 ** 2, axis=(1, 2, 3)))
    conv2_bias = 0.1 * jax.random.normal(kbias, (C,), jnp.float32)

    # One-time parameter setup (hoisted out of the per-call path; cached
    # across calls when weights are static).
    params = prepare_params(bn1_gamma, bn1_beta, v1, g1c,
                            bn2_gamma, bn2_beta, v2, g2c, conv2_bias, H=H, W=W)

    out = residual_block_nchw(x_nchw, params["bands"], params["affine"])
    out = jax.block_until_ready(out)

    w1_oihw = _weight_norm(v1, g1c)
    w2_oihw = _weight_norm(v2, g2c)
    ref = _reference(x_nchw, bn1_gamma, bn1_beta, w1_oihw,
                     bn2_gamma, bn2_beta, w2_oihw, conv2_bias)

    assert out.shape == (N, C, H, W)
    # bf16 MXU operands (per perf review) give ~1e-3-RMS deviation vs the f32
    # reference once the two BN re-normalizations amplify the rounding; the
    # tolerance reflects the bf16 numeric, with f32 accumulation throughout.
    assert jnp.allclose(out, ref, atol=1e-2, rtol=1e-2), \
        float(jnp.max(jnp.abs(out - ref)))

    print("KERNEL_OK")
</pallas_src>

<mosaic_0001>
module attributes {stable_mosaic.version = 11 : i64} {
  func.func @_resblock_kernel(%arg0: i32, %arg1: memref<16x128xf32, #tpu.memory_space<vmem>>, %arg2: memref<8x128xf32, #tpu.memory_space<vmem>>, %arg3: memref<6x128x128xbf16, #tpu.memory_space<vmem>>, %arg4: memref<16x128xf32, #tpu.memory_space<vmem>>) attributes {dimension_semantics = [#tpu.dimension_semantics<arbitrary>], iteration_bounds = array<i64: 1>, scalar_prefetch = 0 : i64, scratch_operands = 0 : i64, tpu.core_type = #tpu.core_type<tc>, window_params = [{pipeline_mode = #tpu.pipeline_mode<synchronous>, transform_indices = @transform_0, window_bounds = array<i64: 16, 128>}, {pipeline_mode = #tpu.pipeline_mode<synchronous>, transform_indices = @transform_1, window_bounds = array<i64: 8, 128>}, {pipeline_mode = #tpu.pipeline_mode<synchronous>, transform_indices = @transform_2, window_bounds = array<i64: 6, 128, 128>}, {pipeline_mode = #tpu.pipeline_mode<synchronous>, transform_indices = @transform_3, window_bounds = array<i64: 16, 128>}]} {
    %c0 = arith.constant 0 : index
    %c0_0 = arith.constant 0 : index
    %0 = vector.load %arg1[%c0, %c0_0] : memref<16x128xf32, #tpu.memory_space<vmem>>, vector<16x128xf32>
    %c0_1 = arith.constant 0 : index
    %c0_2 = arith.constant 0 : index
    %1 = vector.load %arg2[%c0_1, %c0_2] : memref<8x128xf32, #tpu.memory_space<vmem>>, vector<8x128xf32>
    %2 = vector.extract_strided_slice %1 {offsets = [0, 0], sizes = [1, 128], strides = [1, 1]} : vector<8x128xf32> to vector<1x128xf32>
    %3 = vector.extract_strided_slice %1 {offsets = [1, 0], sizes = [1, 128], strides = [1, 1]} : vector<8x128xf32> to vector<1x128xf32>
    %4 = vector.extract_strided_slice %1 {offsets = [2, 0], sizes = [1, 128], strides = [1, 1]} : vector<8x128xf32> to vector<1x128xf32>
    %5 = vector.extract_strided_slice %1 {offsets = [3, 0], sizes = [1, 128], strides = [1, 1]} : vector<8x128xf32> to vector<1x128xf32>
    %6 = vector.extract_strided_slice %1 {offsets = [4, 0], sizes = [1, 128], strides = [1, 1]} : vector<8x128xf32> to vector<1x128xf32>
    %7 = tpu.iota {dimensions = array<i32: 0>} : vector<16x1xi32>
    %c8_i32 = arith.constant 8 : i32
    %c0_i32 = arith.constant 0 : i32
    %8 = arith.cmpi eq, %c8_i32, %c0_i32 : i32
    %c1_i32 = arith.constant 1 : i32
    %9 = arith.select %8, %c1_i32, %c8_i32 : i32
    %10 = vector.broadcast %9 : i32 to vector<16x1xi32>
    %11 = arith.remsi %7, %10 : vector<16x1xi32>
    %c0_i32_3 = arith.constant 0 : i32
    %12 = vector.broadcast %c0_i32_3 : i32 to vector<16x1xi32>
    %13 = arith.cmpi ne, %11, %12 : vector<16x1xi32>
    %c0_i32_4 = arith.constant 0 : i32
    %14 = vector.broadcast %c0_i32_4 : i32 to vector<16x1xi32>
    %15 = arith.cmpi slt, %11, %14 : vector<16x1xi32>
    %c0_i32_5 = arith.constant 0 : i32
    %16 = arith.cmpi slt, %9, %c0_i32_5 : i32
    %17 = vector.broadcast %16 : i1 to vector<16x1xi1>
    %18 = vector.broadcast %17 : vector<16x1xi1> to vector<16x1xi1>
    %19 = arith.xori %15, %18 : vector<16x1xi1>
    %20 = arith.andi %19, %13 : vector<16x1xi1>
    %21 = vector.broadcast %9 : i32 to vector<16x1xi32>
    %22 = arith.addi %11, %21 : vector<16x1xi32>
    %23 = arith.select %20, %22, %11 : vector<16x1xi1>, vector<16x1xi32>
    %c7_i32 = arith.constant 7 : i32
    %24 = vector.broadcast %c7_i32 : i32 to vector<16x1xi32>
    %25 = arith.cmpi ne, %23, %24 : vector<16x1xi32>
    %26 = arith.extui %25 : vector<16x1xi1> to vector<16x1xi32>
    %27 = arith.sitofp %26 : vector<16x1xi32> to vector<16x1xf32>
    %c0_i32_6 = arith.constant 0 : i32
    %28 = vector.broadcast %c0_i32_6 : i32 to vector<16x1xi32>
    %29 = arith.cmpi ne, %23, %28 : vector<16x1xi32>
    %30 = arith.extui %29 : vector<16x1xi1> to vector<16x1xi32>
    %31 = arith.sitofp %30 : vector<16x1xi32> to vector<16x1xf32>
    %cst = arith.constant dense<0.000000e+00> : vector<128xf32>
    %32 = vector.multi_reduction <add>, %0, %cst [0] : vector<16x128xf32> to vector<128xf32>
    %33 = vector.shape_cast %32 : vector<128xf32> to vector<1x128xf32>
    %c4_i32 = arith.constant 4 : i32
    %34 = tpu.dynamic_rotate %33 by %c4_i32 dim 1 : vector<1x128xf32>, i32 -> vector<1x128xf32>
    %35 = arith.addf %33, %34 : vector<1x128xf32>
    %c8_i32_7 = arith.constant 8 : i32
    %36 = tpu.dynamic_rotate %35 by %c8_i32_7 dim 1 : vector<1x128xf32>, i32 -> vector<1x128xf32>
    %37 = arith.addf %35, %36 : vector<1x128xf32>
    %c16_i32 = arith.constant 16 : i32
    %38 = tpu.dynamic_rotate %37 by %c16_i32 dim 1 : vector<1x128xf32>, i32 -> vector<1x128xf32>
    %39 = arith.addf %37, %38 : vector<1x128xf32>
    %c32_i32 = arith.constant 32 : i32
    %40 = tpu.dynamic_rotate %39 by %c32_i32 dim 1 : vector<1x128xf32>, i32 -> vector<1x128xf32>
    %41 = arith.addf %39, %40 : vector<1x128xf32>
    %c64_i32 = arith.constant 64 : i32
    %42 = tpu.dynamic_rotate %41 by %c64_i32 dim 1 : vector<1x128xf32>, i32 -> vector<1x128xf32>
    %43 = arith.addf %41, %42 : vector<1x128xf32>
    %cst_8 = arith.constant 0.001953125 : f32
    %44 = vector.broadcast %cst_8 : f32 to vector<1x128xf32>
    %45 = arith.mulf %43, %44 : vector<1x128xf32>
    %46 = vector.broadcast %45 : vector<1x128xf32> to vector<16x128xf32>
    %47 = arith.subf %0, %46 : vector<16x128xf32>
    %48 = arith.mulf %47, %47 : vector<16x128xf32>
    %cst_9 = arith.constant dense<0.000000e+00> : vector<128xf32>
    %49 = vector.multi_reduction <add>, %48, %cst_9 [0] : vector<16x128xf32> to vector<128xf32>
    %50 = vector.shape_cast %49 : vector<128xf32> to vector<1x128xf32>
    %c4_i32_10 = arith.constant 4 : i32
    %51 = tpu.dynamic_rotate %50 by %c4_i32_10 dim 1 : vector<1x128xf32>, i32 -> vector<1x128xf32>
    %52 = arith.addf %50, %51 : vector<1x128xf32>
    %c8_i32_11 = arith.constant 8 : i32
    %53 = tpu.dynamic_rotate %52 by %c8_i32_11 dim 1 : vector<1x128xf32>, i32 -> vector<1x128xf32>
    %54 = arith.addf %52, %53 : vector<1x128xf32>
    %c16_i32_12 = arith.constant 16 : i32
    %55 = tpu.dynamic_rotate %54 by %c16_i32_12 dim 1 : vector<1x128xf32>, i32 -> vector<1x128xf32>
    %56 = arith.addf %54, %55 : vector<1x128xf32>
    %c32_i32_13 = arith.constant 32 : i32
    %57 = tpu.dynamic_rotate %56 by %c32_i32_13 dim 1 : vector<1x128xf32>, i32 -> vector<1x128xf32>
    %58 = arith.addf %56, %57 : vector<1x128xf32>
    %c64_i32_14 = arith.constant 64 : i32
    %59 = tpu.dynamic_rotate %58 by %c64_i32_14 dim 1 : vector<1x128xf32>, i32 -> vector<1x128xf32>
    %60 = arith.addf %58, %59 : vector<1x128xf32>
    %cst_15 = arith.constant 0.001953125 : f32
    %61 = vector.broadcast %cst_15 : f32 to vector<1x128xf32>
    %62 = arith.mulf %60, %61 : vector<1x128xf32>
    %cst_16 = arith.constant 9.99999974E-6 : f32
    %63 = vector.broadcast %cst_16 : f32 to vector<1x128xf32>
    %64 = arith.addf %62, %63 : vector<1x128xf32>
    %65 = math.rsqrt %64 : vector<1x128xf32>
    %66 = arith.mulf %2, %65 : vector<1x128xf32>
    %67 = vector.broadcast %66 : vector<1x128xf32> to vector<16x128xf32>
    %68 = arith.mulf %47, %67 : vector<16x128xf32>
    %69 = vector.broadcast %3 : vector<1x128xf32> to vector<16x128xf32>
    %70 = arith.addf %68, %69 : vector<16x128xf32>
    %cst_17 = arith.constant 0.000000e+00 : f32
    %71 = vector.broadcast %cst_17 : f32 to vector<16x128xf32>
    %72 = arith.maximumf %70, %71 : vector<16x128xf32>
    %73 = arith.truncf %72 : vector<16x128xf32> to vector<16x128xbf16>
    %c1 = arith.constant 1 : index
    %c0_18 = arith.constant 0 : index
    %c0_19 = arith.constant 0 : index
    %74 = vector.load %arg3[%c1, %c0_18, %c0_19] : memref<6x128x128xbf16, #tpu.memory_space<vmem>>, vector<1x128x128xbf16>
    %75 = vector.shape_cast %74 : vector<1x128x128xbf16> to vector<128x128xbf16>
    %cst_20 = arith.constant dense<0.000000e+00> : vector<16x128xf32>
    %76 = tpu.matmul %73, %75, %cst_20 {dimension_numbers = #tpu.dot_dimension_numbers<[1], [0], [0], [1], [0, 0, 1, 1], [], []>} : vector<16x128xbf16>, vector<128x128xbf16>, vector<16x128xf32> -> vector<16x128xf32>
    %c15_i32 = arith.constant 15 : i32
    %77 = tpu.dynamic_rotate %72 by %c15_i32 dim 0 : vector<16x128xf32>, i32 -> vector<16x128xf32>
    %78 = vector.broadcast %27 : vector<16x1xf32> to vector<16x128xf32>
    %79 = arith.mulf %77, %78 : vector<16x128xf32>
    %80 = arith.truncf %79 : vector<16x128xf32> to vector<16x128xbf16>
    %c2 = arith.constant 2 : index
    %c0_21 = arith.constant 0 : index
    %c0_22 = arith.constant 0 : index
    %81 = vector.load %arg3[%c2, %c0_21, %c0_22] : memref<6x128x128xbf16, #tpu.memory_space<vmem>>, vector<1x128x128xbf16>
    %82 = vector.shape_cast %81 : vector<1x128x128xbf16> to vector<128x128xbf16>
    %cst_23 = arith.constant dense<0.000000e+00> : vector<16x128xf32>
    %83 = tpu.matmul %80, %82, %cst_23 {dimension_numbers = #tpu.dot_dimension_numbers<[1], [0], [0], [1], [0, 0, 1, 1], [], []>} : vector<16x128xbf16>, vector<128x128xbf16>, vector<16x128xf32> -> vector<16x128xf32>
    %84 = arith.addf %76, %83 : vector<16x128xf32>
    %c1_i32_24 = arith.constant 1 : i32
    %85 = tpu.dynamic_rotate %72 by %c1_i32_24 dim 0 : vector<16x128xf32>, i32 -> vector<16x128xf32>
    %86 = vector.broadcast %31 : vector<16x1xf32> to vector<16x128xf32>
    %87 = arith.mulf %85, %86 : vector<16x128xf32>
    %88 = arith.truncf %87 : vector<16x128xf32> to vector<16x128xbf16>
    %c0_25 = arith.constant 0 : index
    %c0_26 = arith.constant 0 : index
    %c0_27 = arith.constant 0 : index
    %89 = vector.load %arg3[%c0_25, %c0_26, %c0_27] : memref<6x128x128xbf16, #tpu.memory_space<vmem>>, vector<1x128x128xbf16>
    %90 = vector.shape_cast %89 : vector<1x128x128xbf16> to vector<128x128xbf16>
    %cst_28 = arith.constant dense<0.000000e+00> : vector<16x128xf32>
    %91 = tpu.matmul %88, %90, %cst_28 {dimension_numbers = #tpu.dot_dimension_numbers<[1], [0], [0], [1], [0, 0, 1, 1], [], []>} : vector<16x128xbf16>, vector<128x128xbf16>, vector<16x128xf32> -> vector<16x128xf32>
    %92 = arith.addf %84, %91 : vector<16x128xf32>
    %cst_29 = arith.constant dense<0.000000e+00> : vector<128xf32>
    %93 = vector.multi_reduction <add>, %92, %cst_29 [0] : vector<16x128xf32> to vector<128xf32>
    %94 = vector.shape_cast %93 : vector<128xf32> to vector<1x128xf32>
    %c4_i32_30 = arith.constant 4 : i32
    %95 = tpu.dynamic_rotate %94 by %c4_i32_30 dim 1 : vector<1x128xf32>, i32 -> vector<1x128xf32>
    %96 = arith.addf %94, %95 : vector<1x128xf32>
    %c8_i32_31 = arith.constant 8 : i32
    %97 = tpu.dynamic_rotate %96 by %c8_i32_31 dim 1 : vector<1x128xf32>, i32 -> vector<1x128xf32>
    %98 = arith.addf %96, %97 : vector<1x128xf32>
    %c16_i32_32 = arith.constant 16 : i32
    %99 = tpu.dynamic_rotate %98 by %c16_i32_32 dim 1 : vector<1x128xf32>, i32 -> vector<1x128xf32>
    %100 = arith.addf %98, %99 : vector<1x128xf32>
    %c32_i32_33 = arith.constant 32 : i32
    %101 = tpu.dynamic_rotate %100 by %c32_i32_33 dim 1 : vector<1x128xf32>, i32 -> vector<1x128xf32>
    %102 = arith.addf %100, %101 : vector<1x128xf32>
    %c64_i32_34 = arith.constant 64 : i32
    %103 = tpu.dynamic_rotate %102 by %c64_i32_34 dim 1 : vector<1x128xf32>, i32 -> vector<1x128xf32>
    %104 = arith.addf %102, %103 : vector<1x128xf32>
    %cst_35 = arith.constant 0.001953125 : f32
    %105 = vector.broadcast %cst_35 : f32 to vector<1x128xf32>
    %106 = arith.mulf %104, %105 : vector<1x128xf32>
    %107 = vector.broadcast %106 : vector<1x128xf32> to vector<16x128xf32>
    %108 = arith.subf %92, %107 : vector<16x128xf32>
    %109 = arith.mulf %108, %108 : vector<16x128xf32>
    %cst_36 = arith.constant dense<0.000000e+00> : vector<128xf32>
    %110 = vector.multi_reduction <add>, %109, %cst_36 [0] : vector<16x128xf32> to vector<128xf32>
    %111 = vector.shape_cast %110 : vector<128xf32> to vector<1x128xf32>
    %c4_i32_37 = arith.constant 4 : i32
    %112 = tpu.dynamic_rotate %111 by %c4_i32_37 dim 1 : vector<1x128xf32>, i32 -> vector<1x128xf32>
    %113 = arith.addf %111, %112 : vector<1x128xf32>
    %c8_i32_38 = arith.constant 8 : i32
    %114 = tpu.dynamic_rotate %113 by %c8_i32_38 dim 1 : vector<1x128xf32>, i32 -> vector<1x128xf32>
    %115 = arith.addf %113, %114 : vector<1x128xf32>
    %c16_i32_39 = arith.constant 16 : i32
    %116 = tpu.dynamic_rotate %115 by %c16_i32_39 dim 1 : vector<1x128xf32>, i32 -> vector<1x128xf32>
    %117 = arith.addf %115, %116 : vector<1x128xf32>
    %c32_i32_40 = arith.constant 32 : i32
    %118 = tpu.dynamic_rotate %117 by %c32_i32_40 dim 1 : vector<1x128xf32>, i32 -> vector<1x128xf32>
    %119 = arith.addf %117, %118 : vector<1x128xf32>
    %c64_i32_41 = arith.constant 64 : i32
    %120 = tpu.dynamic_rotate %119 by %c64_i32_41 dim 1 : vector<1x128xf32>, i32 -> vector<1x128xf32>
    %121 = arith.addf %119, %120 : vector<1x128xf32>
    %cst_42 = arith.constant 0.001953125 : f32
    %122 = vector.broadcast %cst_42 : f32 to vector<1x128xf32>
    %123 = arith.mulf %121, %122 : vector<1x128xf32>
    %cst_43 = arith.constant 9.99999974E-6 : f32
    %124 = vector.broadcast %cst_43 : f32 to vector<1x128xf32>
    %125 = arith.addf %123, %124 : vector<1x128xf32>
    %126 = math.rsqrt %125 : vector<1x128xf32>
    %127 = arith.mulf %4, %126 : vector<1x128xf32>
    %128 = vector.broadcast %127 : vector<1x128xf32> to vector<16x128xf32>
    %129 = arith.mulf %108, %128 : vector<16x128xf32>
    %130 = vector.broadcast %5 : vector<1x128xf32> to vector<16x128xf32>
    %131 = arith.addf %129, %130 : vector<16x128xf32>
    %cst_44 = arith.constant 0.000000e+00 : f32
    %132 = vector.broadcast %cst_44 : f32 to vector<16x128xf32>
    %133 = arith.maximumf %131, %132 : vector<16x128xf32>
    %134 = arith.truncf %133 : vector<16x128xf32> to vector<16x128xbf16>
    %c4 = arith.constant 4 : index
    %c0_45 = arith.constant 0 : index
    %c0_46 = arith.constant 0 : index
    %135 = vector.load %arg3[%c4, %c0_45, %c0_46] : memref<6x128x128xbf16, #tpu.memory_space<vmem>>, vector<1x128x128xbf16>
    %136 = vector.shape_cast %135 : vector<1x128x128xbf16> to vector<128x128xbf16>
    %cst_47 = arith.constant dense<0.000000e+00> : vector<16x128xf32>
    %137 = tpu.matmul %134, %136, %cst_47 {dimension_numbers = #tpu.dot_dimension_numbers<[1], [0], [0], [1], [0, 0, 1, 1], [], []>} : vector<16x128xbf16>, vector<128x128xbf16>, vector<16x128xf32> -> vector<16x128xf32>
    %c15_i32_48 = arith.constant 15 : i32
    %138 = tpu.dynamic_rotate %133 by %c15_i32_48 dim 0 : vector<16x128xf32>, i32 -> vector<16x128xf32>
    %139 = vector.broadcast %27 : vector<16x1xf32> to vector<16x128xf32>
    %140 = arith.mulf %138, %139 : vector<16x128xf32>
    %141 = arith.truncf %140 : vector<16x128xf32> to vector<16x128xbf16>
    %c5 = arith.constant 5 : index
    %c0_49 = arith.constant 0 : index
    %c0_50 = arith.constant 0 : index
    %142 = vector.load %arg3[%c5, %c0_49, %c0_50] : memref<6x128x128xbf16, #tpu.memory_space<vmem>>, vector<1x128x128xbf16>
    %143 = vector.shape_cast %142 : vector<1x128x128xbf16> to vector<128x128xbf16>
    %cst_51 = arith.constant dense<0.000000e+00> : vector<16x128xf32>
    %144 = tpu.matmul %141, %143, %cst_51 {dimension_numbers = #tpu.dot_dimension_numbers<[1], [0], [0], [1], [0, 0, 1, 1], [], []>} : vector<16x128xbf16>, vector<128x128xbf16>, vector<16x128xf32> -> vector<16x128xf32>
    %145 = arith.addf %137, %144 : vector<16x128xf32>
    %c1_i32_52 = arith.constant 1 : i32
    %146 = tpu.dynamic_rotate %133 by %c1_i32_52 dim 0 : vector<16x128xf32>, i32 -> vector<16x128xf32>
    %147 = vector.broadcast %31 : vector<16x1xf32> to vector<16x128xf32>
    %148 = arith.mulf %146, %147 : vector<16x128xf32>
    %149 = arith.truncf %148 : vector<16x128xf32> to vector<16x128xbf16>
    %c3 = arith.constant 3 : index
    %c0_53 = arith.constant 0 : index
    %c0_54 = arith.constant 0 : index
    %150 = vector.load %arg3[%c3, %c0_53, %c0_54] : memref<6x128x128xbf16, #tpu.memory_space<vmem>>, vector<1x128x128xbf16>
    %151 = vector.shape_cast %150 : vector<1x128x128xbf16> to vector<128x128xbf16>
    %cst_55 = arith.constant dense<0.000000e+00> : vector<16x128xf32>
    %152 = tpu.matmul %149, %151, %cst_55 {dimension_numbers = #tpu.dot_dimension_numbers<[1], [0], [0], [1], [0, 0, 1, 1], [], []>} : vector<16x128xbf16>, vector<128x128xbf16>, vector<16x128xf32> -> vector<16x128xf32>
    %153 = arith.addf %145, %152 : vector<16x128xf32>
    %154 = vector.broadcast %6 : vector<1x128xf32> to vector<16x128xf32>
    %155 = arith.addf %153, %154 : vector<16x128xf32>
    %c0_56 = arith.constant 0 : index
    %c0_57 = arith.constant 0 : index
    %156 = vector.load %arg1[%c0_56, %c0_57] : memref<16x128xf32, #tpu.memory_space<vmem>>, vector<16x128xf32>
    %157 = arith.addf %155, %156 : vector<16x128xf32>
    %c0_58 = arith.constant 0 : index
    %c0_59 = arith.constant 0 : index
    %158 = vector.load %arg4[%c0_58, %c0_59] : memref<16x128xf32, #tpu.memory_space<vmem>>, vector<16x128xf32>
    tpu.vector_store %arg4[%c0_58, %c0_59], %157 {strides = array<i32>} : memref<16x128xf32, #tpu.memory_space<vmem>>, vector<16x128xf32>,
    return
  }
  func.func @transform_0(%arg0: i32) -> (i32, i32) {
    %c0_i32 = arith.constant 0 : i32
    %c0_i32_0 = arith.constant 0 : i32
    %c0_i32_1 = arith.constant 0 : i32
    return %c0_i32, %c0_i32_0 : i32, i32
  }
  func.func @transform_1(%arg0: i32) -> (i32, i32) {
    %c0_i32 = arith.constant 0 : i32
    %c0_i32_0 = arith.constant 0 : i32
    %c0_i32_1 = arith.constant 0 : i32
    return %c0_i32, %c0_i32_0 : i32, i32
  }
  func.func @transform_2(%arg0: i32) -> (i32, i32, i32) {
    %c0_i32 = arith.constant 0 : i32
    %c0_i32_0 = arith.constant 0 : i32
    %c0_i32_1 = arith.constant 0 : i32
    %c0_i32_2 = arith.constant 0 : i32
    return %c0_i32, %c0_i32_0, %c0_i32_1 : i32, i32, i32
  }
  func.func @transform_3(%arg0: i32) -> (i32, i32) {
    %c0_i32 = arith.constant 0 : i32
    %c0_i32_0 = arith.constant 0 : i32
    %c0_i32_1 = arith.constant 0 : i32
    return %c0_i32, %c0_i32_0 : i32, i32
  }
}

</mosaic_0001>

<bundles_post_ra>
// kernel: residual_block_nhwc.1
= control target key start
LH: loop header
LB: loop body
LE: loop exit
PB: predicated region body
PF: predicated region fallthrough
CT: control target
= control target key end

     0   :  { %s1252_s16 = smov 4   ;;  %s1253_s17 = smov 8   ;;  %v18_v17 = vlaneseq  ;;  %v1257_v42 = vmov 0.0   ;;  %vm1258_vm0 = vmmov 0   ;;  %s1607_s0 = inlined_call_operand.vmem [shape: f32[16,128], index: 0, kind: input, shape index: {}]   ;;  %s1608_s2 = inlined_call_operand.vmem [shape: bf16[6,128,128], index: 2, kind: input, shape index: {}]   ;;  %s1609_s1 = inlined_call_operand.vmem [shape: f32[8,128], index: 1, kind: input, shape index: {}]   ;;  %s1610_s3 = inlined_call_operand.vmem [shape: f32[16,128], index: 3, kind: output, shape index: {}]  }
   0x1   :  { %v1282_v0 = vld [vmem:[%s1607_s0] sm:$0xff]  ;;  %v1287_v1 = vld [vmem:[%s1607_s0 + $0x8] sm:$0xff]  ;;  %s1254_s0 = smov 16   ;;  %s1255_s18 = smov 32   ;;  %v1200_v41 = vld [vmem:[%s1608_s2 + $0x78] sm:$0xff]   ;;  %1093 = vmatprep.subr.bf16.mxu1 %v1257_v42  ;;  %1073 = vmatprep.subr.bf16.mxu0 %v1257_v42 }
   0x2   :  { %v57_v2 = vadd.f32 %v1287_v1, %v1282_v0  ;;  %s1256_s19 = smov 64   ;;  %v1296_v18 = vshrl.u32 %v18_v17, 7  ;;  %1094 = vmatpush3.bf16.msra.mxu1 %v1200_v41  ;;  %v1201_v43 = vld [vmem:[%s1608_s2 + $0xb8] sm:$0xff]   ;;  %v1202_v44 = vld [vmem:[%s1608_s2 + $0x70] sm:$0xff]   ;;  %v1204_v46 = vld [vmem:[%s1608_s2 + $0x68] sm:$0xff]   ;;  %1109 = vmatprep.mubr.msk.bf16.mxu1 %vm1258_vm0, %v1257_v42 }
   0x3   :  { %1095 = vmatprep.subr.bf16.mxu1 %v1257_v42  ;;  %1074 = vmatpush3.bf16.msra.mxu0 %v1201_v43  ;;  %v1203_v45 = vld [vmem:[%s1608_s2 + $0xb0] sm:$0xff]   ;;  %v1205_v47 = vld [vmem:[%s1608_s2 + $0xa8] sm:$0xff]   ;;  %v1206_v49 = vld [vmem:[%s1608_s2 + $0x60] sm:$0xff]  }
   0x4   :  { %v58_v3 = vrot.slane %v57_v2, 4  ;;  %v1299_v20 = vsub.s32 0, %v1296_v18  ;;  %1075 = vmatprep.subr.bf16.mxu0 %v1257_v42  ;;  %1089 = vmatprep.mubr.msk.bf16.mxu0 %vm1258_vm0, %v1257_v42  ;;  %v1207_v51 = vld [vmem:[%s1608_s2 + $0xa0] sm:$0xff]   ;;  %v1208_v52 = vld [vmem:[%s1608_s2 + $0x58] sm:$0xff]   ;;  %v1210_v54 = vld [vmem:[%s1608_s2 + $0x50] sm:$0xff]   ;;  %vm148_vm3 = vcmp.lt.s32.totalorder %v1296_v18, 7 }
   0x5   :  { %v1209_v53 = vld [vmem:[%s1608_s2 + $0x98] sm:$0xff]   ;;  %v1211_v55 = vld [vmem:[%s1608_s2 + $0x90] sm:$0xff]   ;;  %v1212_v56 = vld [vmem:[%s1608_s2 + $0x48] sm:$0xff]   ;;  %vm351_vm6 = vcmp.lt.s32.totalorder %v1296_v18, 1 }
   0x6   :  { %v59_v4 = vadd.f32 %v58_v3, %v57_v2  ;;  %1096 = vmatpush3.bf16.msra.mxu1 %v1202_v44  ;;  %v1213_v57 = vld [vmem:[%s1608_s2 + $0x88] sm:$0xff]   ;;  %v1214_v58 = vld [vmem:[%s1608_s2 + $0x40] sm:$0xff]   ;;  %v122_v3 = vsub.s32 1, %v1296_v18 }
   0x7   :  { %1097 = vmatprep.subr.bf16.mxu1 %v1257_v42  ;;  %1076 = vmatpush3.bf16.msra.mxu0 %v1203_v45  ;;  %v1215_v59 = vld [vmem:[%s1608_s2 + $0x80] sm:$0xff]  }
   0x8   :  { %v60_v5 = vrot.slane %v59_v4, 2  ;;  %1077 = vmatprep.subr.bf16.mxu0 %v1257_v42  ;;  %v1390_v2 = vld [vmem:[%s1609_s1] sm:$0xff] }
   0x9   :  { %v1223_v43 = vld [vmem:[%s1608_s2] sm:$0xff]  }
   0xa   :  { %v61_v6 = vadd.f32 %v60_v5, %v59_v4  ;;  %1098 = vmatpush3.bf16.msra.mxu1 %v1204_v46 }
   0xb   :  { %1099 = vmatprep.subr.bf16.mxu1 %v1257_v42  ;;  %1078 = vmatpush3.bf16.msra.mxu0 %v1205_v47 }
   0xc   :  { %v62_v7 = vrot.slane %v61_v6, 1  ;;  %1079 = vmatprep.subr.bf16.mxu0 %v1257_v42 }
   0xe   :  { %v63_v8 = vadd.f32 %v62_v7, %v61_v6  ;;  %1100 = vmatpush3.bf16.msra.mxu1 %v1206_v49  ;;  %v20_v6 = vadd.s32 8, %v1296_v18 }
   0xf   :  { %1101 = vmatprep.subr.bf16.mxu1 %v1257_v42  ;;  %1080 = vmatpush3.bf16.msra.mxu0 %v1207_v51 }
  0x10   :  { %64 = vrot.lane.b32.xlu0 %v63_v8, %s1252_s16  ;;  %1081 = vmatprep.subr.bf16.mxu0 %v1257_v42 }
  0x12   :  { %1102 = vmatpush3.bf16.msra.mxu1 %v1208_v52 }
  0x13   :  { %1103 = vmatprep.subr.bf16.mxu1 %v1257_v42  ;;  %1082 = vmatpush3.bf16.msra.mxu0 %v1209_v53 }
  0x14   :  { %1083 = vmatprep.subr.bf16.mxu0 %v1257_v42 }
  0x16   :  { %1104 = vmatpush3.bf16.msra.mxu1 %v1210_v54 }
  0x17   :  { %1105 = vmatprep.subr.bf16.mxu1 %v1257_v42  ;;  %1084 = vmatpush3.bf16.msra.mxu0 %v1211_v55 }
  0x18   :  { %1085 = vmatprep.subr.bf16.mxu0 %v1257_v42 }
  0x1a   :  { %1106 = vmatpush3.bf16.msra.mxu1 %v1212_v56 }
  0x1b   :  { %1107 = vmatprep.subr.bf16.mxu1 %v1257_v42  ;;  %1086 = vmatpush3.bf16.msra.mxu0 %v1213_v57 }
  0x1c   :  { %1087 = vmatprep.subr.bf16.mxu0 %v1257_v42 }
  0x1e   :  { %1108 = vmatpush3.bf16.msra.mxu1 %v1214_v58 }
  0x1f   :  { %1133 = vmatprep.subr.bf16.mxu1 %v1257_v42  ;;  %1088 = vmatpush3.bf16.msra.mxu0 %v1215_v59 }
  0x20   :  { %1113 = vmatprep.subr.bf16.mxu0 %v1257_v42 }
  0x82   :  { %v65_v9 = vpop.permute.xlu0 %64 }
  0x83   :  { %v66_v10 = vadd.f32 %v65_v9, %v63_v8  ;;  %v123_v8 = vrot.slane %v1390_v2, %v122_v3 }
  0x85   :  { %67 = vrot.lane.b32.xlu0 %v66_v10, %s1253_s17 }
  0xf7   :  { %v68_v11 = vpop.permute.xlu0 %67 }
  0xf8   :  { %v69_v12 = vadd.f32 %v68_v11, %v66_v10  ;;  %v25_v11 = vand.u32 7, %v1296_v18 }
  0xfa   :  { %70 = vrot.lane.b32.xlu1 %v69_v12, %s1254_s0  ;;  %vm45_vm1 = vcmp.ne.s32.totalorder %v25_v11, 7  ;;  %vm51_vm4 = vcmp.ne.s32.totalorder %v25_v11, 0 }
 0x16c   :  { %v71_v13 = vpop.permute.xlu1 %70 }
 0x16d   :  { %v72_v14 = vadd.f32 %v71_v13, %v69_v12  ;;  %v32_v12 = vand.u32 7, %v20_v6 }
 0x16f   :  { %73 = vrot.lane.b32.xlu1 %v72_v14, %s1255_s18  ;;  %vm46_vm2 = vcmp.ne.s32.totalorder %v32_v12, 7  ;;  %vm52_vm5 = vcmp.ne.s32.totalorder %v32_v12, 0 }
 0x1e1   :  { %v74_v15 = vpop.permute.xlu1 %73 }
 0x1e2   :  { %v75_v16 = vadd.f32 %v74_v15, %v72_v14 }
 0x1e4   :  { %76 = vrot.lane.b32.xlu0 %v75_v16, %s1256_s19 }
 0x256   :  { %v77_v19 = vpop.permute.xlu0 %76 }
 0x257   :  { %v78_v21 = vadd.f32 %v77_v19, %v75_v16 }
 0x259   :  { %v79_v22 = vmul.f32 0.001953125, %v78_v21  ;;  %v1402_v21 = vsel %vm45_vm1, 1.0, %v1257_v42 }
 0x25b   :  { %v83_v23 = vrot.slane %v79_v22, %v1299_v20  ;;  %v1405_v22 = vsel %vm46_vm2, 1.0, %v1257_v42 }
 0x25d   :  { %v1303_v24 = vsub.f32 %v1282_v0, %v83_v23  ;;  %v1306_v25 = vsub.f32 %v1287_v1, %v83_v23 }
 0x25f   :  { %v86_v26 = vmul.f32 %v1303_v24, %v1303_v24  ;;  %v87_v27 = vmul.f32 %v1306_v25, %v1306_v25 }
 0x261   :  { %v88_v28 = vadd.f32 %v87_v27, %v86_v26 }
 0x263   :  { %v89_v29 = vrot.slane %v88_v28, 4 }
 0x265   :  { %v90_v30 = vadd.f32 %v89_v29, %v88_v28  ;;  %v1216_v28 = vld [vmem:[%s1608_s2 + $0x38] sm:$0xff]  }
 0x267   :  { %v91_v31 = vrot.slane %v90_v30, 2 }
 0x269   :  { %v92_v32 = vadd.f32 %v91_v31, %v90_v30  ;;  %v1217_v30 = vld [vmem:[%s1608_s2 + $0x30] sm:$0xff]   ;;  %v1218_v31 = vld [vmem:[%s1608_s2 + $0x28] sm:$0xff]  }
 0x26b   :  { %v93_v33 = vrot.slane %v92_v32, 1 }
 0x26d   :  { %v94_v34 = vadd.f32 %v93_v33, %v92_v32  ;;  %v1219_v32 = vld [vmem:[%s1608_s2 + $0x20] sm:$0xff]   ;;  %v1220_v33 = vld [vmem:[%s1608_s2 + $0x18] sm:$0xff]  }
 0x26f   :  { %95 = vrot.lane.b32.xlu1 %v94_v34, %s1252_s16 }
 0x2e1   :  { %v96_v35 = vpop.permute.xlu1 %95 }
 0x2e2   :  { %v97_v36 = vadd.f32 %v96_v35, %v94_v34  ;;  %v1221_v34 = vld [vmem:[%s1608_s2 + $0x10] sm:$0xff]  }
 0x2e4   :  { %98 = vrot.lane.b32.xlu0 %v97_v36, %s1253_s17 }
 0x356   :  { %v99_v37 = vpop.permute.xlu0 %98 }
 0x357   :  { %v100_v38 = vadd.f32 %v99_v37, %v97_v36  ;;  %v1222_v37 = vld [vmem:[%s1608_s2 + $0x8] sm:$0xff]  }
 0x359   :  { %101 = vrot.lane.b32.xlu1 %v100_v38, %s1254_s0 }
 0x3cb   :  { %v102_v39 = vpop.permute.xlu1 %101 }
 0x3cc   :  { %v103_v40 = vadd.f32 %v102_v39, %v100_v38  ;;  %v1446_v38 = vsel %vm51_vm4, 1.0, %v1257_v42  ;;  %v1449_v39 = vsel %vm52_vm5, 1.0, %v1257_v42 }
 0x3ce   :  { %104 = vrot.lane.b32.xlu0 %v103_v40, %s1255_s18 }
 0x440   :  { %v105_v48 = vpop.permute.xlu0 %104 }
 0x441   :  { %v106_v50 = vadd.f32 %v105_v48, %v103_v40 }
 0x443   :  { %107 = vrot.lane.b32.xlu1 %v106_v50, %s1256_s19 }
 0x4b5   :  { %v108_v60 = vpop.permute.xlu1 %107 }
 0x4b6   :  { %v109_v61 = vadd.f32 %v108_v60, %v106_v50 }
 0x4b8   :  { %v110_v62 = vmul.f32 0.001953125, %v109_v61 }
 0x4ba   :  { %v111_v63 = vadd.f32 1e-05, %v110_v62 }
 0x4bc   :  { %1248 = vrsqrt.f32 %v111_v63 }
 0x4c9   :  { %v1249_v4 = vpop.eup %1248 }
 0x4ca   :  { %v113_v5 = vmul.f32 %v1249_v4, %v1390_v2 }
 0x4cc   :  { %v117_v7 = vrot.slane %v113_v5, %v1299_v20 }
 0x4ce   :  { %v118_v9 = vmul.f32 %v117_v7, %v1303_v24  ;;  %v119_v10 = vmul.f32 %v117_v7, %v1306_v25 }
 0x4d0   :  { %v124_v13 = vadd.f32 %v123_v8, %v118_v9  ;;  %v125_v14 = vadd.f32 %v123_v8, %v119_v10 }
 0x4d2   :  { %v126_v15 = vmax.f32 %v124_v13, 0.0  ;;  %v127_v16 = vmax.f32 %v125_v14, 0.0 }
 0x4d4   :  { %v128_v17 = vpack.c.bf16 %v127_v16, %v126_v15  ;;  %v146_v19 = vrot.slane %v126_v15, 1  ;;  %v147_v23 = vrot.slane %v127_v16, 1  ;;  %v349_v35 = vrot.slane %v126_v15, 7 }
 0x4d5   :  { %v350_v36 = vrot.slane %v127_v16, 7 }
 0x4d6   :  { %1110 = vmatmul.mubr.bf16.vlgmr.msra.gmra.mxu1 %v128_v17  ;;  %v149_v24 = vsel %vm148_vm3, %v146_v19, %v147_v23  ;;  %v150_v25 = vsel %vm148_vm3, %v147_v23, %v146_v19 }
 0x4d7   :  { %1149 = vmatprep.mubr.msk.bf16.mxu1 %vm1258_vm0, %v1257_v42  ;;  %v151_v26 = vmul.f32 %v1402_v21, %v149_v24  ;;  %v152_v27 = vmul.f32 %v1405_v22, %v150_v25  ;;  %v352_v40 = vsel %vm351_vm6, %v349_v35, %v350_v36  ;;  %v353_v41 = vsel %vm351_vm6, %v350_v36, %v349_v35 }
 0x4d8   :  { %v354_v44 = vmul.f32 %v1446_v38, %v353_v41  ;;  %v355_v45 = vmul.f32 %v1449_v39, %v352_v40 }
 0x4d9   :  { %v153_v29 = vpack.c.bf16 %v152_v27, %v151_v26 }
 0x4da   :  { %v356_v46 = vpack.c.bf16 %v355_v45, %v354_v44  ;;  %v1224_v44 = vld [vmem:[%s1608_s2 + $0x138] sm:$0xff]  }
 0x4db   :  { %1090 = vmatmul.mubr.bf16.vlgmr.msra.gmra.mxu0 %v153_v29  ;;  %v1225_v45 = vld [vmem:[%s1608_s2 + $0x178] sm:$0xff]  }
 0x4dc   :  { %1114 = vmatpush3.bf16.msra.mxu0 %v1216_v28  ;;  %1129 = vmatprep.mubr.msk.bf16.mxu0 %vm1258_vm0, %v1257_v42 }
 0x4dd   :  { %1115 = vmatprep.subr.bf16.mxu0 %v1257_v42  ;;  %1134 = vmatpush3.bf16.msra.mxu1 %v1225_v45 }
 0x4de   :  { %1135 = vmatprep.subr.bf16.mxu1 %v1257_v42 }
 0x4e0   :  { %1116 = vmatpush3.bf16.msra.mxu0 %v1217_v30 }
 0x4e1   :  { %1117 = vmatprep.subr.bf16.mxu0 %v1257_v42 }
 0x4e4   :  { %1118 = vmatpush3.bf16.msra.mxu0 %v1218_v31 }
 0x4e5   :  { %1119 = vmatprep.subr.bf16.mxu0 %v1257_v42 }
 0x4e8   :  { %1120 = vmatpush3.bf16.msra.mxu0 %v1219_v32 }
 0x4e9   :  { %1121 = vmatprep.subr.bf16.mxu0 %v1257_v42 }
 0x4ec   :  { %1122 = vmatpush3.bf16.msra.mxu0 %v1220_v33 }
 0x4ed   :  { %1123 = vmatprep.subr.bf16.mxu0 %v1257_v42 }
 0x4f0   :  { %1124 = vmatpush3.bf16.msra.mxu0 %v1221_v34 }
 0x4f1   :  { %1125 = vmatprep.subr.bf16.mxu0 %v1257_v42 }
 0x4f4   :  { %1126 = vmatpush3.bf16.msra.mxu0 %v1222_v37 }
 0x4f5   :  { %1127 = vmatprep.subr.bf16.mxu0 %v1257_v42 }
 0x4f8   :  { %1128 = vmatpush3.bf16.msra.mxu0 %v1223_v43 }
 0x4f9   :  { %1153 = vmatprep.subr.bf16.mxu0 %v1257_v42 }
 0x4fb   :  { %1130 = vmatmul.mubr.bf16.vlgmr.msra.gmra.mxu0 %v356_v46  ;;  %v1226_v46 = vld [vmem:[%s1608_s2 + $0x130] sm:$0xff]  }
 0x4fc   :  { %1169 = vmatprep.mubr.msk.bf16.mxu0 %vm1258_vm0, %v1257_v42  ;;  %1154 = vmatpush3.bf16.msra.mxu0 %v1224_v44 }
 0x4fd   :  { %1155 = vmatprep.subr.bf16.mxu0 %v1257_v42 }
 0x500   :  { %1156 = vmatpush3.bf16.msra.mxu0 %v1226_v46 }
 0x501   :  { %1157 = vmatprep.subr.bf16.mxu0 %v1257_v42 }
 0x596   :  { %v342_v47 = vpop.f32.mrf.mxu1 }
 0x598   :  { %v1111_v48 = vpop.f32.mrf.mxu1 }
 0x599   :  { %v1228_v48 = vld [vmem:[%s1608_s2 + $0x128] sm:$0xff]  }
 0x59a   :  { %v345_v49 = vpop.f32.mrf.mxu1  ;;  %1158 = vmatpush3.bf16.msra.mxu0 %v1228_v48 }
 0x59b   :  { %v253_v50 = vpop.f32.mrf.mxu0  ;;  %1159 = vmatprep.subr.bf16.mxu0 %v1257_v42 }
 0x59c   :  { %v1112_v51 = vpop.f32.mrf.mxu1  ;;  %v343_v57 = vadd.f32 %v342_v47, %v253_v50  ;;  %v1227_v47 = vld [vmem:[%s1608_s2 + $0x170] sm:$0xff]  }
 0x59d   :  { %v1091_v52 = vpop.f32.mrf.mxu0  ;;  %1136 = vmatpush3.bf16.msra.mxu1 %v1227_v47  ;;  %v1229_v51 = vld [vmem:[%s1608_s2 + $0x168] sm:$0xff]  }
 0x59e   :  { %1137 = vmatprep.subr.bf16.mxu1 %v1257_v42  ;;  %v1230_v52 = vld [vmem:[%s1608_s2 + $0x120] sm:$0xff]  }
 0x59f   :  { %v256_v53 = vpop.f32.mrf.mxu0  ;;  %1160 = vmatpush3.bf16.msra.mxu0 %v1230_v52 }
 0x5a0   :  { %v346_v58 = vadd.f32 %v345_v49, %v256_v53  ;;  %1161 = vmatprep.subr.bf16.mxu0 %v1257_v42  ;;  %v1231_v53 = vld [vmem:[%s1608_s2 + $0x160] sm:$0xff]  }
 0x5a1   :  { %v1092_v54 = vpop.f32.mrf.mxu0  ;;  %1138 = vmatpush3.bf16.msra.mxu1 %v1229_v51 }
 0x5a2   :  { %1139 = vmatprep.subr.bf16.mxu1 %v1257_v42  ;;  %v1232_v54 = vld [vmem:[%s1608_s2 + $0x118] sm:$0xff]  }
 0x5a3   :  { %1162 = vmatpush3.bf16.msra.mxu0 %v1232_v54 }
 0x5a4   :  { %1163 = vmatprep.subr.bf16.mxu0 %v1257_v42 }
 0x5a5   :  { %1140 = vmatpush3.bf16.msra.mxu1 %v1231_v53  ;;  %v875_v53 = vsub.s32 4, %v1296_v18 }
 0x5a6   :  { %1141 = vmatprep.subr.bf16.mxu1 %v1257_v42 }
 0x5bb   :  { %v455_v55 = vpop.f32.mrf.mxu0 }
 0x5bc   :  { %v462_v60 = vadd.f32 %v455_v55, %v343_v57  ;;  %v1233_v55 = vld [vmem:[%s1608_s2 + $0x158] sm:$0xff]   ;;  %v1235_v57 = vld [vmem:[%s1608_s2 + $0x150] sm:$0xff]  }
 0x5bd   :  { %v1131_v56 = vpop.f32.mrf.mxu0  ;;  %1142 = vmatpush3.bf16.msra.mxu1 %v1233_v55 }
 0x5be   :  { %v1234_v56 = vld [vmem:[%s1608_s2 + $0x110] sm:$0xff]   ;;  %1143 = vmatprep.subr.bf16.mxu1 %v1257_v42 }
 0x5bf   :  { %v458_v59 = vpop.f32.mrf.mxu0  ;;  %1164 = vmatpush3.bf16.msra.mxu0 %v1234_v56 }
 0x5c0   :  { %v463_v61 = vadd.f32 %v458_v59, %v346_v58  ;;  %1165 = vmatprep.subr.bf16.mxu0 %v1257_v42  ;;  %v1236_v58 = vld [vmem:[%s1608_s2 + $0x108] sm:$0xff]  }
 0x5c1   :  { %v1132_v62 = vpop.f32.mrf.mxu0  ;;  %1144 = vmatpush3.bf16.msra.mxu1 %v1235_v57  ;;  %v1237_v59 = vld [vmem:[%s1608_s2 + $0x148] sm:$0xff]  }
 0x5c2   :  { %v464_v63 = vadd.f32 %v463_v61, %v462_v60  ;;  %1145 = vmatprep.subr.bf16.mxu1 %v1257_v42 }
 0x5c3   :  { %1166 = vmatpush3.bf16.msra.mxu0 %v1236_v58 }
 0x5c4   :  { %v465_v3 = vrot.slane %v464_v63, 4  ;;  %1167 = vmatprep.subr.bf16.mxu0 %v1257_v42 }
 0x5c5   :  { %1146 = vmatpush3.bf16.msra.mxu1 %v1237_v59 }
 0x5c6   :  { %v466_v4 = vadd.f32 %v465_v3, %v464_v63  ;;  %1147 = vmatprep.subr.bf16.mxu1 %v1257_v42 }
 0x5c8   :  { %v467_v5 = vrot.slane %v466_v4, 2 }
 0x5ca   :  { %v468_v6 = vadd.f32 %v467_v5, %v466_v4 }
 0x5cc   :  { %v469_v7 = vrot.slane %v468_v6, 1 }
 0x5ce   :  { %v470_v8 = vadd.f32 %v469_v7, %v468_v6  ;;  %v526_v6 = vsub.s32 2, %v1296_v18 }
 0x5d0   :  { %471 = vrot.lane.b32.xlu0 %v470_v8, %s1252_s16 }
 0x642   :  { %v472_v9 = vpop.permute.xlu0 %471 }
 0x643   :  { %v473_v10 = vadd.f32 %v472_v9, %v470_v8  ;;  %v532_v8 = vsub.s32 3, %v1296_v18 }
 0x645   :  { %474 = vrot.lane.b32.xlu1 %v473_v10, %s1253_s17 }
 0x6b7   :  { %v475_v11 = vpop.permute.xlu1 %474 }
 0x6b8   :  { %v476_v12 = vadd.f32 %v475_v11, %v473_v10  ;;  %v533_v11 = vrot.slane %v1390_v2, %v532_v8 }
 0x6ba   :  { %477 = vrot.lane.b32.xlu0 %v476_v12, %s1254_s0 }
 0x72c   :  { %v478_v13 = vpop.permute.xlu0 %477 }
 0x72d   :  { %v479_v14 = vadd.f32 %v478_v13, %v476_v12 }
 0x72f   :  { %480 = vrot.lane.b32.xlu1 %v479_v14, %s1255_s18 }
 0x7a1   :  { %v481_v15 = vpop.permute.xlu1 %480 }
 0x7a2   :  { %v482_v16 = vadd.f32 %v481_v15, %v479_v14 }
 0x7a4   :  { %483 = vrot.lane.b32.xlu0 %v482_v16, %s1256_s19 }
 0x816   :  { %v484_v17 = vpop.permute.xlu0 %483 }
 0x817   :  { %v485_v19 = vadd.f32 %v484_v17, %v482_v16 }
 0x819   :  { %v486_v23 = vmul.f32 0.001953125, %v485_v19 }
 0x81b   :  { %v490_v24 = vrot.slane %v486_v23, %v1299_v20 }
 0x81d   :  { %v1470_v25 = vsub.f32 %v462_v60, %v490_v24  ;;  %v1472_v26 = vsub.f32 %v463_v61, %v490_v24  ;;  %v1238_v60 = vld [vmem:[%s1608_s2 + $0x100] sm:$0xff]  }
 0x81e   :  { %1168 = vmatpush3.bf16.msra.mxu0 %v1238_v60  ;;  %v1239_v61 = vld [vmem:[%s1608_s2 + $0x140] sm:$0xff]  }
 0x81f   :  { %v493_v27 = vmul.f32 %v1470_v25, %v1470_v25  ;;  %v494_v28 = vmul.f32 %v1472_v26, %v1472_v26  ;;  %1148 = vmatpush3.bf16.msra.mxu1 %v1239_v61 }
 0x820   :  { %1173 = vmatprep.subr.bf16.mxu1 %v1257_v42 }
 0x821   :  { %v495_v29 = vadd.f32 %v494_v28, %v493_v27 }
 0x823   :  { %v496_v30 = vrot.slane %v495_v29, 4 }
 0x825   :  { %v497_v31 = vadd.f32 %v496_v30, %v495_v29 }
 0x827   :  { %v498_v32 = vrot.slane %v497_v31, 2 }
 0x829   :  { %v499_v33 = vadd.f32 %v498_v32, %v497_v31  ;;  %v1241_v31 = vld [vmem:[%s1608_s2 + $0xf0] sm:$0xff]   ;;  %v1244_v32 = vld [vmem:[%s1608_s2 + $0xd8] sm:$0xff]  }
 0x82b   :  { %v500_v34 = vrot.slane %v499_v33, 1 }
 0x82d   :  { %v501_v35 = vadd.f32 %v500_v34, %v499_v33  ;;  %v1245_v33 = vld [vmem:[%s1608_s2 + $0xd0] sm:$0xff]  }
 0x82f   :  { %502 = vrot.lane.b32.xlu1 %v501_v35, %s1252_s16 }
 0x8a1   :  { %v503_v20 = vpop.permute.xlu1 %502 }
 0x8a2   :  { %v504_v36 = vadd.f32 %v503_v20, %v501_v35  ;;  %v1246_v20 = vld [vmem:[%s1608_s2 + $0xc8] sm:$0xff]  }
 0x8a4   :  { %505 = vrot.lane.b32.xlu0 %v504_v36, %s1253_s17 }
 0x916   :  { %v506_v37 = vpop.permute.xlu0 %505 }
 0x917   :  { %v507_v40 = vadd.f32 %v506_v37, %v504_v36 }
 0x919   :  { %508 = vrot.lane.b32.xlu1 %v507_v40, %s1254_s0 }
 0x98b   :  { %v509_v41 = vpop.permute.xlu1 %508 }
 0x98c   :  { %v510_v43 = vadd.f32 %v509_v41, %v507_v40  ;;  %v1247_v40 = vld [vmem:[%s1608_s2 + $0xc0] sm:$0xff]  }
 0x98e   :  { %511 = vrot.lane.b32.xlu0 %v510_v43, %s1255_s18 }
 0xa00   :  { %v512_v49 = vpop.permute.xlu0 %511 }
 0xa01   :  { %v513_v50 = vadd.f32 %v512_v49, %v510_v43 }
 0xa03   :  { %514 = vrot.lane.b32.xlu1 %v513_v50, %s1256_s19 }
 0xa75   :  { %v515_v62 = vpop.permute.xlu1 %514 }
 0xa76   :  { %v516_v63 = vadd.f32 %v515_v62, %v513_v50 }
 0xa78   :  { %v517_v3 = vmul.f32 0.001953125, %v516_v63 }
 0xa7a   :  { %v518_v4 = vadd.f32 1e-05, %v517_v3 }
 0xa7c   :  { %1250 = vrsqrt.f32 %v518_v4 }
 0xa89   :  { %v1251_v5 = vpop.eup %1250 }
 0xa8a   :  { %v521_v7 = vrot.slane %v1251_v5, 6 }
 0xa8c   :  { %v523_v9 = vmul.f32 %v521_v7, %v1390_v2 }
 0xa8e   :  { %v527_v10 = vrot.slane %v523_v9, %v526_v6 }
 0xa90   :  { %v528_v12 = vmul.f32 %v527_v10, %v1470_v25  ;;  %v529_v13 = vmul.f32 %v527_v10, %v1472_v26  ;;  %v1240_v26 = vld [vmem:[%s1608_s2 + $0xf8] sm:$0xff]  }
 0xa92   :  { %v534_v14 = vadd.f32 %v533_v11, %v528_v12  ;;  %v535_v15 = vadd.f32 %v533_v11, %v529_v13 }
 0xa94   :  { %v536_v16 = vmax.f32 %v534_v14, 0.0  ;;  %v537_v17 = vmax.f32 %v535_v15, 0.0 }
 0xa96   :  { %v538_v19 = vpack.c.bf16 %v537_v17, %v536_v16  ;;  %v556_v23 = vrot.slane %v536_v16, 1  ;;  %v557_v24 = vrot.slane %v537_v17, 1  ;;  %v758_v34 = vrot.slane %v536_v16, 7 }
 0xa97   :  { %v759_v35 = vrot.slane %v537_v17, 7 }
 0xa98   :  { %1170 = vmatmul.mubr.bf16.vlgmr.msra.gmra.mxu0 %v538_v19  ;;  %v558_v27 = vsel %vm148_vm3, %v556_v23, %v557_v24  ;;  %v559_v28 = vsel %vm148_vm3, %v557_v24, %v556_v23 }
 0xa99   :  { %v560_v29 = vmul.f32 %v1402_v21, %v558_v27  ;;  %v561_v25 = vmul.f32 %v1405_v22, %v559_v28  ;;  %v1242_v21 = vld [vmem:[%s1608_s2 + $0xe8] sm:$0xff]   ;;  %v1243_v22 = vld [vmem:[%s1608_s2 + $0xe0] sm:$0xff]   ;;  %v760_v36 = vsel %vm351_vm6, %v758_v34, %v759_v35  ;;  %v761_v37 = vsel %vm351_vm6, %v759_v35, %v758_v34 }
 0xa9a   :  { %v762_v41 = vmul.f32 %v1446_v38, %v761_v37  ;;  %v763_v43 = vmul.f32 %v1449_v39, %v760_v36 }
 0xa9b   :  { %v562_v30 = vpack.c.bf16 %v561_v25, %v560_v29 }
 0xa9c   :  { %v764_v44 = vpack.c.bf16 %v763_v43, %v762_v41 }
 0xa9d   :  { %1150 = vmatmul.mubr.bf16.vlgmr.msra.gmra.mxu1 %v562_v30 }
 0xa9e   :  { %1174 = vmatpush3.bf16.msra.mxu1 %v1240_v26  ;;  %1189 = vmatprep.mubr.msk.bf16.mxu1 %vm1258_vm0, %v1257_v42 }
 0xa9f   :  { %1175 = vmatprep.subr.bf16.mxu1 %v1257_v42 }
 0xaa2   :  { %1176 = vmatpush3.bf16.msra.mxu1 %v1241_v31 }
 0xaa3   :  { %1177 = vmatprep.subr.bf16.mxu1 %v1257_v42 }
 0xaa6   :  { %1178 = vmatpush3.bf16.msra.mxu1 %v1242_v21 }
 0xaa7   :  { %1179 = vmatprep.subr.bf16.mxu1 %v1257_v42 }
 0xaaa   :  { %1180 = vmatpush3.bf16.msra.mxu1 %v1243_v22 }
 0xaab   :  { %1181 = vmatprep.subr.bf16.mxu1 %v1257_v42 }
 0xaae   :  { %1182 = vmatpush3.bf16.msra.mxu1 %v1244_v32 }
 0xaaf   :  { %1183 = vmatprep.subr.bf16.mxu1 %v1257_v42 }
 0xab2   :  { %1184 = vmatpush3.bf16.msra.mxu1 %v1245_v33 }
 0xab3   :  { %1185 = vmatprep.subr.bf16.mxu1 %v1257_v42 }
 0xab6   :  { %1186 = vmatpush3.bf16.msra.mxu1 %v1246_v20 }
 0xab7   :  { %1187 = vmatprep.subr.bf16.mxu1 %v1257_v42  ;;  %v876_v42 = vrot.slane %v1390_v2, %v875_v53 }
 0xaba   :  { %1188 = vmatpush3.bf16.msra.mxu1 %v1247_v40 }
 0xabd   :  { %1190 = vmatmul.mubr.bf16.vlgmr.msra.gmra.mxu1 %v764_v44 }
 0xb58   :  { %v751_v45 = vpop.f32.mrf.mxu0 }
 0xb5a   :  { %v1171_v46 = vpop.f32.mrf.mxu0 }
 0xb5c   :  { %v754_v47 = vpop.f32.mrf.mxu0 }
 0xb5d   :  { %v662_v48 = vpop.f32.mrf.mxu1 }
 0xb5e   :  { %v1172_v49 = vpop.f32.mrf.mxu0  ;;  %v752_v54 = vadd.f32 %v751_v45, %v662_v48 }
 0xb5f   :  { %v1151_v50 = vpop.f32.mrf.mxu1 }
 0xb61   :  { %v665_v51 = vpop.f32.mrf.mxu1 }
 0xb62   :  { %v755_v39 = vadd.f32 %v754_v47, %v665_v51 }
 0xb63   :  { %v1152_v52 = vpop.f32.mrf.mxu1 }
 0xb7d   :  { %v864_v55 = vpop.f32.mrf.mxu1 }
 0xb7e   :  { %v871_v38 = vadd.f32 %v864_v55, %v752_v54 }
 0xb7f   :  { %v1191_v56 = vpop.f32.mrf.mxu1 }
 0xb80   :  { %v877_v57 = vadd.f32 %v876_v42, %v871_v38 }
 0xb81   :  { %v867_v58 = vpop.f32.mrf.mxu1 }
 0xb82   :  { %v879_v59 = vadd.f32 %v877_v57, %v1282_v0  ;;  %v872_v60 = vadd.f32 %v867_v58, %v755_v39 }
 0xb83   :  { %v1192_v61 = vpop.f32.mrf.mxu1 }
 0xb84   :  { %881 = vst [vmem:[%s1610_s3] sm:$0xff] %v879_v59  ;;  %v878_v62 = vadd.f32 %v876_v42, %v872_v60 }
 0xb86   :  { %v880_v18 = vadd.f32 %v878_v62, %v1287_v1 }
 0xb88   :  { %882 = vst [vmem:[%s1610_s3 + $0x8] sm:$0xff] %v880_v18 }

</bundles_post_ra>
